<compile_context>
chip_gen: v6e
topology: v6e:2x2x1
jax: 0.10.0
libtpu: 0.0.40
codegen_flags: <defaults>
</compile_context>

<pallas_src>
import functools
import math

import jax
import jax.numpy as jnp
from jax.experimental import pallas as pl
from jax.experimental.pallas import tpu as pltpu


def _round_up(x, m):
    return ((x + m - 1) // m) * m


def _fc_kernel(x_ref, wt_ref, b_ref, o_ref, *, use_activation):
    # Dropout(p=0.0) is the identity; elided.
    # TODO(synk): training-mode dropout with p>0 would need pltpu.prng_* masking.
    x = x_ref[...].astype(jnp.float32)              # elementwise in f32 (native on v5e too)
    if use_activation:
        x = jnp.tanh(x)                             # EUP transcendental
    acc = jnp.dot(x.astype(wt_ref.dtype),           # bf16 (or f32) MXU inputs
                  wt_ref[...],
                  preferred_element_type=jnp.float32)   # f32 accumulation
    acc = acc + b_ref[...].astype(jnp.float32)      # bias broadcast over batch tile
    o_ref[...] = acc.astype(o_ref.dtype)


def prepare_fc_params(weight, bias, compute_dtype=jnp.bfloat16):
    """Hoist per-call work to load time.

    weight: (Dout, Din) as in nn.Linear  ->  returns W^T padded to
    (round_up(Din,128), round_up(Dout,128)) in `compute_dtype`, bias padded to
    (1, round_up(Dout,128)), plus the true Dout for output slicing.
    """
    d_out, d_in = weight.shape
    d_in_p = _round_up(d_in, 128)
    d_out_p = _round_up(d_out, 128)   # lane-dense output stores, full MXU N dim
    wt = jnp.zeros((d_in_p, d_out_p), compute_dtype)
    wt = wt.at[:d_in, :d_out].set(weight.T.astype(compute_dtype))
    b = jnp.zeros((1, d_out_p), bias.dtype).at[0, :d_out].set(bias)
    return wt, b, d_out


def _pick_block_b(B, d_in_p, d_out_p, w_bytes, x_itemsize):
    """Largest multiple-of-8 batch tile that keeps resident weight + 2x
    double-buffered x/out tiles under a conservative ~12 MiB VMEM budget."""
    budget = 12 * 1024 * 1024
    per_row = 2 * (d_in_p * x_itemsize + d_out_p * x_itemsize)  # 2x: double-buffer
    block_b = min(512, _round_up(B, 8))
    while block_b > 8 and w_bytes + block_b * per_row > budget:
        block_b //= 2
    return max(8, _round_up(block_b, 8))


def fc_layer(x, wt_p, b_p, out_dim, use_activation=True, block_b=None):
    """x: (B, Din); wt_p/b_p from prepare_fc_params -> (B, out_dim)."""
    B, d_in = x.shape
    d_in_p, d_out_p = wt_p.shape
    assert d_in <= d_in_p

    x_itemsize = jnp.dtype(x.dtype).itemsize
    w_bytes = d_in_p * d_out_p * jnp.dtype(wt_p.dtype).itemsize
    if block_b is None:
        block_b = _pick_block_b(B, d_in_p, d_out_p, w_bytes, x_itemsize)
    b_pad = _round_up(B, block_b)

    x_p = x
    if (b_pad, d_in_p) != (B, d_in):
        x_p = jnp.zeros((b_pad, d_in_p), x.dtype).at[:B, :d_in].set(x)

    kernel = functools.partial(_fc_kernel, use_activation=use_activation)

    cost = pl.CostEstimate(
        flops=2 * b_pad * d_in_p * d_out_p,
        transcendentals=b_pad * d_in_p if use_activation else 0,
        bytes_accessed=(b_pad * d_in_p * x_itemsize          # x read
                        + w_bytes                            # weight read
                        + d_out_p * jnp.dtype(b_p.dtype).itemsize   # bias read
                        + b_pad * d_out_p * x_itemsize),     # out write
    )

    out_p = pl.pallas_call(
        kernel,
        out_shape=jax.ShapeDtypeStruct((b_pad, d_out_p), x.dtype),
        grid_spec=pl.GridSpec(
            grid=(b_pad // block_b,),
            in_specs=[
                pl.BlockSpec((block_b, d_in_p), lambda i: (i, 0)),   # streamed x tiles
                pl.BlockSpec((d_in_p, d_out_p), lambda i: (0, 0)),   # VMEM-resident W^T
                pl.BlockSpec((1, d_out_p), lambda i: (0, 0)),        # VMEM-resident bias
            ],
            out_specs=pl.BlockSpec((block_b, d_out_p), lambda i: (i, 0)),
        ),
        compiler_params=pltpu.CompilerParams(
            dimension_semantics=("parallel",)),   # megacore-shardable on v7x
        cost_estimate=cost,
    )(x_p, wt_p, b_p)

    return out_p[:B, :out_dim]


def init_fc_params(key, input_dim, output_dim, dtype=jnp.float32):
    """Deterministic init matching FCLayer.__init__.

    weight: xavier_uniform_  -> U(-a, a), a = sqrt(6/(fan_in+fan_out))
    bias:   PyTorch Linear default -> U(-1/sqrt(fan_in), 1/sqrt(fan_in))
    """
    kw, kb = jax.random.split(key)
    a = math.sqrt(6.0 / (input_dim + output_dim))
    weight = jax.random.uniform(kw, (output_dim, input_dim), dtype,
                                minval=-a, maxval=a)
    bound = 1.0 / math.sqrt(input_dim)
    bias = jax.random.uniform(kb, (output_dim,), dtype,
                              minval=-bound, maxval=bound)
    return weight, bias


if __name__ == "__main__":
    key = jax.random.PRNGKey(0)
    kx, kp = jax.random.split(key)

    batch, input_dim, output_dim = 8, 32, 16
    x = jax.random.normal(kx, (batch, input_dim), jnp.float32)
    weight, bias = init_fc_params(kp, input_dim, output_dim)

    # reference (PyTorch-exact semantics) in plain JAX
    y_ref = jnp.tanh(x) @ weight.T + bias

    # bf16-MXU production path (f32 accumulation)
    wt_bf16, b_pad, d_out = prepare_fc_params(weight, bias, jnp.bfloat16)
    y = fc_layer(x, wt_bf16, b_pad, d_out, use_activation=True)
    jax.block_until_ready(y)
    assert y.shape == (batch, output_dim)
    assert jnp.allclose(y, y_ref, atol=2e-2, rtol=2e-2)

    # f32 path for a tight numerical check against the reference
    wt_f32, b_pad32, d_out = prepare_fc_params(weight, bias, jnp.float32)
    y32 = fc_layer(x, wt_f32, b_pad32, d_out, use_activation=True)
    jax.block_until_ready(y32)
    assert jnp.allclose(y32, y_ref, atol=1e-5, rtol=1e-5)

    # use_activation=False path (linear only)
    y_lin_ref = x @ weight.T + bias
    y_lin = fc_layer(x, wt_f32, b_pad32, d_out, use_activation=False)
    jax.block_until_ready(y_lin)
    assert jnp.allclose(y_lin, y_lin_ref, atol=1e-5, rtol=1e-5)

    print("KERNEL_OK")
</pallas_src>

<mosaic_0001>
module attributes {stable_mosaic.version = 11 : i64} {
  func.func @_fc_kernel(%arg0: i32, %arg1: memref<8x128xf32, #tpu.memory_space<vmem>>, %arg2: memref<128x128xbf16, #tpu.memory_space<vmem>>, %arg3: memref<1x128xf32, #tpu.memory_space<vmem>>, %arg4: memref<8x128xf32, #tpu.memory_space<vmem>>) attributes {dimension_semantics = [#tpu.dimension_semantics<parallel>], iteration_bounds = array<i64: 1>, scalar_prefetch = 0 : i64, scratch_operands = 0 : i64, tpu.core_type = #tpu.core_type<tc>, window_params = [{transform_indices = @transform_0, window_bounds = array<i64: 8, 128>}, {pipeline_mode = #tpu.pipeline_mode<synchronous>, transform_indices = @transform_1, window_bounds = array<i64: 128, 128>}, {pipeline_mode = #tpu.pipeline_mode<synchronous>, transform_indices = @transform_2, window_bounds = array<i64: 1, 128>}, {transform_indices = @transform_3, window_bounds = array<i64: 8, 128>}]} {
    %c0 = arith.constant 0 : index
    %c0_0 = arith.constant 0 : index
    %0 = vector.load %arg1[%c0, %c0_0] : memref<8x128xf32, #tpu.memory_space<vmem>>, vector<8x128xf32>
    %1 = math.tanh %0 : vector<8x128xf32>
    %2 = arith.truncf %1 : vector<8x128xf32> to vector<8x128xbf16>
    %c0_1 = arith.constant 0 : index
    %c0_2 = arith.constant 0 : index
    %3 = vector.load %arg2[%c0_1, %c0_2] : memref<128x128xbf16, #tpu.memory_space<vmem>>, vector<128x128xbf16>
    %cst = arith.constant dense<0.000000e+00> : vector<8x128xf32>
    %4 = tpu.matmul %2, %3, %cst {dimension_numbers = #tpu.dot_dimension_numbers<[1], [0], [0], [1], [0, 0, 1, 1], [], []>} : vector<8x128xbf16>, vector<128x128xbf16>, vector<8x128xf32> -> vector<8x128xf32>
    %c0_3 = arith.constant 0 : index
    %c0_4 = arith.constant 0 : index
    %5 = vector.load %arg3[%c0_3, %c0_4] : memref<1x128xf32, #tpu.memory_space<vmem>>, vector<1x128xf32>
    %6 = vector.broadcast %5 : vector<1x128xf32> to vector<8x128xf32>
    %7 = arith.addf %4, %6 : vector<8x128xf32>
    %c0_5 = arith.constant 0 : index
    %c0_6 = arith.constant 0 : index
    %8 = vector.load %arg4[%c0_5, %c0_6] : memref<8x128xf32, #tpu.memory_space<vmem>>, vector<8x128xf32>
    tpu.vector_store %arg4[%c0_5, %c0_6], %7 {strides = array<i32>} : memref<8x128xf32, #tpu.memory_space<vmem>>, vector<8x128xf32>,
    return
  }
  func.func @transform_0(%arg0: i32) -> (i32, i32) {
    %c0_i32 = arith.constant 0 : i32
    %c0_i32_0 = arith.constant 0 : i32
    return %arg0, %c0_i32 : i32, i32
  }
  func.func @transform_1(%arg0: i32) -> (i32, i32) {
    %c0_i32 = arith.constant 0 : i32
    %c0_i32_0 = arith.constant 0 : i32
    %c0_i32_1 = arith.constant 0 : i32
    return %c0_i32, %c0_i32_0 : i32, i32
  }
  func.func @transform_2(%arg0: i32) -> (i32, i32) {
    %c0_i32 = arith.constant 0 : i32
    %c0_i32_0 = arith.constant 0 : i32
    %c0_i32_1 = arith.constant 0 : i32
    return %c0_i32, %c0_i32_0 : i32, i32
  }
  func.func @transform_3(%arg0: i32) -> (i32, i32) {
    %c0_i32 = arith.constant 0 : i32
    %c0_i32_0 = arith.constant 0 : i32
    return %arg0, %c0_i32 : i32, i32
  }
}

</mosaic_0001>

<bundles_post_ra>
// kernel: tpu_custom_call.1
= control target key start
LH: loop header
LB: loop body
LE: loop exit
PB: predicated region body
PF: predicated region fallthrough
CT: control target
= control target key end

     0   :  { %8 = vsyncpa [#allocation3], 0  ;;  %s333_s0 = inlined_call_operand.hbm [shape: f32[8,128], index: 0, kind: input, shape index: {}]   ;;  %s334_s1 = inlined_call_operand.hbm [shape: bf16[128,128], index: 1, kind: input, shape index: {}]   ;;  %s335_s2 = inlined_call_operand.vmem [shape: f32[1,128], index: 2, kind: input, shape index: {}]   ;;  %s336_s3 = inlined_call_operand.hbm [shape: f32[8,128], index: 3, kind: output, shape index: {}]  }
   0x1   :  { %9 = vsyncpa [#allocation6], 0 }
   0x2   :  { %10 = vsyncpa [#allocation4], 0  ;;  %s294_s12 = smov [#allocation2]   ;;  %s295_s14 = smov [#allocation5]  }
   0x3   :  { %s17_s13 = sshll.u32 %s294_s12, 4  ;;  %s26_s15 = sshll.u32 %s295_s14, 4  ;;  %s18_s13 = int_to_ptr.vmem [resolvable:$true] %s17_s13  ;;  %s27_s15 = int_to_ptr.vmem [resolvable:$true] %s26_s15 }
   0x4   :  { %s236_s16 = scalar_lea.vmem %s18_s13, 128  ;;  %p241_p1 = scmp.lt.s32.totalorder %s18_s13, %s18_s13 }
   0x5   :  { %p237_p0 = scmp.ne.s32.totalorder %s18_s13, %s236_s16  ;;  %p242_p2 = scmp.lt.s32.totalorder %s236_s16, %s236_s16 }
   0x7   :  { %p243_p3 = por %p242_p2, %p241_p1 }
   0x9   :  { %p244_p4 = pnand %p243_p3, %p237_p0 }
   0xb   :  { %247 = shalt.err (!%p244_p4)
}
   0xc   :  { %20 = dma.hbm_to_vmem [thread:$0]  %s333_s0, 128, %s18_s13, [#allocation3]  }
   0xd   :  { %s256_s19 = scalar_lea.vmem %s27_s15, 1024  ;;  %p261_p6 = scmp.lt.s32.totalorder %s27_s15, %s27_s15 }
   0xe   :  { %p257_p5 = scmp.ne.s32.totalorder %s27_s15, %s256_s19  ;;  %p262_p7 = scmp.lt.s32.totalorder %s256_s19, %s256_s19 }
  0x10   :  { %p263_p8 = por %p262_p7, %p261_p6 }
  0x12   :  { %p264_p9 = pnand %p263_p8, %p257_p5 }
  0x14   :  { %267 = shalt.err (!%p264_p9)
}
  0x15   :  { %s296_s20 = smov 64   ;;  %s297_s21 = smov 4  }
  0x16   :  { %32 = dma.hbm_to_vmem [thread:$0]  %s334_s1, 1024, %s27_s15, [#allocation6], %s296_s20, %s296_s20, %s297_s21  }
  0x17   :  { %288 = dma.done.wait [#allocation3], 128  }
  0x18   :  { %289 = vsyncadd [#allocation3], 4294967168 }
  0x19   :  { %290 = dma.done.wait [#allocation6], 1024  }
  0x1a   :  { %291 = vsyncadd [#allocation6], 4294966272  ;;  %v298_v0 = vmov 0.0   ;;  %vm299_vm0 = vmmov 0   ;;  %v218_v1 = vld [vmem:[#allocation5 + $0x38] sm:$0xff]   ;;  %v219_v2 = vld [vmem:[#allocation5 + $0x30] sm:$0xff]  }
  0x1b   :  { %191 = vmatprep.subr.bf16.mxu0 %v298_v0  ;;  %207 = vmatprep.mubr.msk.bf16.mxu0 %vm299_vm0, %v298_v0  ;;  %v220_v3 = vld [vmem:[#allocation5 + $0x28] sm:$0xff]   ;;  %v221_v4 = vld [vmem:[#allocation5 + $0x20] sm:$0xff]   ;;  %v42_v5 = vld [vmem:[#allocation2] sm:$0xff]  ;;  %s300_s24 = smov [#allocation7]  }
  0x1c   :  { %192 = vmatpush3.bf16.msra.mxu0 %v218_v1  ;;  %226 = vtanh.f32 %v42_v5  ;;  %v222_v6 = vld [vmem:[#allocation5 + $0x18] sm:$0xff]   ;;  %v223_v7 = vld [vmem:[#allocation5 + $0x10] sm:$0xff]   ;;  %v224_v8 = vld [vmem:[#allocation5 + $0x8] sm:$0xff]   ;;  %s163_s25 = sshll.u32 %s300_s24, 4  ;;  %s164_s25 = int_to_ptr.vmem [resolvable:$true] %s163_s25 }
  0x1d   :  { %193 = vmatprep.subr.bf16.mxu0 %v298_v0  ;;  %v225_v10 = vld [vmem:[#allocation5] sm:$0xff]   ;;  %v173_v12 = vld [vmem:[%s335_s2] ss:$0 sm:$0xff]  ;;  %s268_s26 = scalar_lea.vmem %s164_s25, 128  ;;  %p273_p11 = scmp.lt.s32.totalorder %s164_s25, %s164_s25 }
  0x1e   :  { %p269_p10 = scmp.ne.s32.totalorder %s164_s25, %s268_s26  ;;  %p274_p12 = scmp.lt.s32.totalorder %s268_s26, %s268_s26 }
  0x20   :  { %194 = vmatpush3.bf16.msra.mxu0 %v219_v2  ;;  %p275_p13 = por %p274_p12, %p273_p11 }
  0x21   :  { %195 = vmatprep.subr.bf16.mxu0 %v298_v0 }
  0x22   :  { %p276_p0 = pnand %p275_p13, %p269_p10 }
  0x24   :  { %196 = vmatpush3.bf16.msra.mxu0 %v220_v3 }
  0x25   :  { %197 = vmatprep.subr.bf16.mxu0 %v298_v0 }
  0x28   :  { %198 = vmatpush3.bf16.msra.mxu0 %v221_v4 }
  0x29   :  { %199 = vmatprep.subr.bf16.mxu0 %v298_v0  ;;  %v227_v9 = vpop.eup %226 }
  0x2a   :  { %v44_v11 = vpack.c.bf16 %v227_v9, %v227_v9 }
  0x2c   :  { %200 = vmatpush3.bf16.msra.mxu0 %v222_v6 }
  0x2d   :  { %201 = vmatprep.subr.bf16.mxu0 %v298_v0 }
  0x30   :  { %202 = vmatpush3.bf16.msra.mxu0 %v223_v7 }
  0x31   :  { %203 = vmatprep.subr.bf16.mxu0 %v298_v0 }
  0x34   :  { %204 = vmatpush3.bf16.msra.mxu0 %v224_v8 }
  0x35   :  { %205 = vmatprep.subr.bf16.mxu0 %v298_v0 }
  0x38   :  { %206 = vmatpush3.bf16.msra.mxu0 %v225_v10 }
  0x3b   :  { %208 = vmatmul.mubr.bf16.vlgmr.msra.gmra.mxu0 %v44_v11 }
  0xfb   :  { %v150_v13 = vpop.f32.mrf.mxu0 }
  0xfc   :  { %v151_v14 = vadd.f32 %v173_v12, %v150_v13 }
  0xfd   :  { %v209_v15 = vpop.f32.mrf.mxu0 }
  0xfe   :  { %156 = vst [vmem:[#allocation7] sm:$0xff] %v151_v14 }
  0xff   :  { %v153_v16 = vpop.f32.mrf.mxu0 }
 0x100   :  { %279 = shalt.err (!%p276_p0)
}
 0x101   :  { %166 = dma.vmem_to_hbm [thread:$0]  %s164_s25, 128, %s336_s3, [#allocation4]   ;;  %v210_v17 = vpop.f32.mrf.mxu0 }
 0x102   :  { %292 = dma.done.wait [#allocation4], 128  }
 0x103   :  { %293 = vsyncadd [#allocation4], 4294967168 }
 0x104   :  { %170 = vsyncpa [#allocation3], 1 }
 0x105   :  { %171 = vsyncpa [#allocation6], 1 }
 0x106   :  { %172 = vsyncpa [#allocation4], 1 }

</bundles_post_ra>
